<compile_context>
chip_gen: v6e
topology: v6e:2x2x1
jax: 0.10.0
libtpu: 0.0.40
codegen_flags: <defaults>
</compile_context>

<pallas_src>
import functools

import numpy as np
import jax
import jax.numpy as jnp
from jax import lax
from jax.experimental import pallas as pl
from jax.experimental.pallas import tpu as pltpu

NEG_SLOPE = 0.01   # nn.LeakyReLU default
BN_EPS = 1e-5      # nn.BatchNorm2d default


def _leaky(x):
    return jnp.where(x >= 0, x, NEG_SLOPE * x)


def _boundary_masks(H, W, K):
    """(K*K, H*W) float32 {0,1} masks: zero exactly the lanes where a circular
    lane-roll by the tap's flat offset would wrap across a row / image edge."""
    P = K // 2
    q = np.arange(H * W)
    h = q // W
    w = q % W
    rows = []
    for kh in range(K):
        dh = kh - P
        mh = (h + dh >= 0) & (h + dh < H)
        for kw in range(K):
            dw = kw - P
            mw = (w + dw >= 0) & (w + dw < W)
            rows.append((mh & mw).astype(np.float32))
    return np.stack(rows, axis=0)


def _pick_batch_factor(N, HW, target_lanes=1024):
    """Images per grid step. Caps vreg pressure and keeps >=2 steps (v7x TCs)."""
    cap = max(1, target_lanes // HW)
    if N >= 2:
        cap = min(cap, N // 2)
    cap = max(cap, 1)
    best = 1
    for b in range(1, cap + 1):
        if N % b == 0:
            best = b
    return best


def _ssconv1_kernel(x_ref, w_ref, mask_ref, out_ref, *, K, W, B, Cin):
    # x_ref   : (1, B*Cin, HW)   B images' channels stacked on sublanes
    # w_ref   : (B*Cout, B*Cin + 1 + K*K + 1) packed params:
    #           [0 : B*Cin]           block-diag 1x1 weight (BN scale folded in)
    #           [B*Cin]               pointwise bias (from folded BN shift)
    #           [B*Cin+1 : +K*K]      depthwise taps
    #           [last]                depthwise bias
    # mask_ref: (K*K, HW)        float32 {0,1} boundary masks per tap
    # out_ref : (1, B*Cout, HW)
    P = K // 2
    BCin = B * Cin
    KK = K * K

    x = x_ref[0]                                         # (B*Cin, HW)
    w = w_ref[...]

    pw = w[:, :BCin]                                     # (B*Cout, B*Cin)
    pwb = w[:, BCin:BCin + 1]                            # (B*Cout, 1)
    db = w[:, BCin + 1 + KK:BCin + 2 + KK]               # (B*Cout, 1)

    # BN (pre-folded) + 1x1 pointwise conv on the MXU: lane-dense (B*Cout, HW).
    y = jnp.dot(pw, x, preferred_element_type=jnp.float32)
    y = _leaky(y + pwb)                                  # Act1

    HW = y.shape[-1]

    # Depthwise KxK conv with zero padding: K*K lane rolls (XLU) + precomputed
    # boundary masks + per-channel MACs (VPU).  Flat shift of (dh, dw) is
    # dh*W + dw; the masks zero exactly the wrapped lanes.
    acc = None
    for kh in range(K):
        for kw in range(K):
            idx = kh * K + kw
            off = (kh - P) * W + (kw - P)
            t = y if off == 0 else pltpu.roll(y, (-off) % HW, axis=1)
            if not (kh == P and kw == P):                # center tap never wraps
                t = t * mask_ref[idx:idx + 1, :]         # (1, HW) sublane-broadcast
            tap = w[:, BCin + 1 + idx:BCin + 2 + idx]    # (B*Cout, 1) lane-broadcast
            contrib = t * tap
            acc = contrib if acc is None else acc + contrib

    out_ref[0] = _leaky(acc + db).astype(out_ref.dtype)  # Act2


def ssconv1_forward(x_nchw, gamma, beta, pw, dw, db):
    """x_nchw: (N, Cin, H, W); pw: (Cout, Cin, 1, 1); dw: (Cout, 1, K, K); db: (Cout,)."""
    N, Cin, H, W = x_nchw.shape
    Cout = pw.shape[0]
    K = dw.shape[2]
    assert K % 2 == 1, "roll+mask depthwise assumes odd kernel (padding=K//2 centered)"
    HW = H * W

    x_nchw = x_nchw.astype(jnp.float32)

    # BatchNorm2d (training mode, fresh module): batch stats over (N,H,W),
    # biased variance — one fused pass (sibling reductions over the same input).
    x3 = x_nchw.reshape(N, Cin, HW)
    cnt = float(N * HW)
    s1 = jnp.sum(x3, axis=(0, 2))
    s2 = jnp.sum(x3 * x3, axis=(0, 2))
    mean = s1 / cnt
    var = jnp.maximum(s2 / cnt - mean * mean, 0.0)       # guard fp32 cancellation
    scale = gamma.astype(jnp.float32) / jnp.sqrt(var + BN_EPS)
    shift = beta.astype(jnp.float32) - mean * scale

    # Fold BN into the 1x1 conv (exact: both linear, pre-Act1).
    pw_mat = pw[:, :, 0, 0].astype(jnp.float32)          # (Cout, Cin)
    pw_folded = pw_mat * scale[None, :]
    pw_bias = (pw_mat @ shift).reshape(Cout, 1)
    dw_mat = dw[:, 0].reshape(Cout, K * K).astype(jnp.float32)
    db_col = db.reshape(Cout, 1).astype(jnp.float32)

    # Sublane-batch B images per grid step (x / out restructuring is pure reshape).
    B = _pick_batch_factor(N, HW)
    G = N // B

    pw_blk = jnp.kron(jnp.eye(B, dtype=jnp.float32), pw_folded)   # (B*Cout, B*Cin)
    w_packed = jnp.concatenate(
        [pw_blk,
         jnp.tile(pw_bias, (B, 1)),
         jnp.tile(dw_mat, (B, 1)),
         jnp.tile(db_col, (B, 1))], axis=1)              # (B*Cout, B*Cin+K*K+2)

    masks = jnp.asarray(_boundary_masks(H, W, K))        # (K*K, HW)

    x_in = x_nchw.reshape(G, B * Cin, HW)                # pure reshape (row-major)

    flops = 2 * N * Cout * Cin * HW + 2 * N * Cout * K * K * HW
    bytes_accessed = 4 * (x_in.size + G * B * Cout * HW + w_packed.size + masks.size)

    out = pl.pallas_call(
        functools.partial(_ssconv1_kernel, K=K, W=W, B=B, Cin=Cin),
        out_shape=jax.ShapeDtypeStruct((G, B * Cout, HW), jnp.float32),
        grid_spec=pltpu.PrefetchScalarGridSpec(
            num_scalar_prefetch=0,
            grid=(G,),
            in_specs=[
                pl.BlockSpec((1, B * Cin, HW), lambda g: (g, 0, 0)),
                pl.BlockSpec(w_packed.shape, lambda g: (0, 0)),   # fetched once
                pl.BlockSpec(masks.shape, lambda g: (0, 0)),      # fetched once
            ],
            out_specs=pl.BlockSpec((1, B * Cout, HW), lambda g: (g, 0, 0)),
        ),
        compiler_params=pltpu.CompilerParams(
            dimension_semantics=("parallel",)),
        cost_estimate=pl.CostEstimate(
            flops=flops, transcendentals=0, bytes_accessed=bytes_accessed),
    )(x_in, w_packed, masks)

    # (G, B*Cout, HW) -> (N, Cout, H, W): pure reshape.
    return out.reshape(N, Cout, H, W)


def ssconv1_reference(x, gamma, beta, pw, dw, db):
    """Pure-JAX reference (same semantics as the PyTorch module forward)."""
    mean = jnp.mean(x, axis=(0, 2, 3), keepdims=True)
    var = jnp.var(x, axis=(0, 2, 3), keepdims=True)
    xn = (x - mean) / jnp.sqrt(var + BN_EPS)
    xn = xn * gamma.reshape(1, -1, 1, 1) + beta.reshape(1, -1, 1, 1)
    y = lax.conv_general_dilated(xn, pw, (1, 1), 'VALID',
                                 dimension_numbers=('NCHW', 'OIHW', 'NCHW'))
    y = _leaky(y)
    P = dw.shape[2] // 2
    z = lax.conv_general_dilated(y, dw, (1, 1), [(P, P), (P, P)],
                                 dimension_numbers=('NCHW', 'OIHW', 'NCHW'),
                                 feature_group_count=dw.shape[0])
    z = z + db.reshape(1, -1, 1, 1)
    return _leaky(z)


if __name__ == "__main__":
    # Small shapes consistent with the module: batch=2, in_ch=4, out_ch=8, 16x16, k=3.
    N, Cin, Cout, H, W, K = 2, 4, 8, 16, 16, 3

    key = jax.random.PRNGKey(0)
    kx, kg, kb, kpw, kdw, kdb, kx2 = jax.random.split(key, 7)

    x = jax.random.normal(kx, (N, Cin, H, W), dtype=jnp.float32)

    # Deterministic synthetic parameters (shapes from SSConv1.__init__).
    gamma = jax.random.uniform(kg, (Cin,), minval=0.5, maxval=1.5, dtype=jnp.float32)
    beta = 0.1 * jax.random.normal(kb, (Cin,), dtype=jnp.float32)
    pw = 0.2 * jax.random.normal(kpw, (Cout, Cin, 1, 1), dtype=jnp.float32)   # point_conv.weight
    dw = 0.2 * jax.random.normal(kdw, (Cout, 1, K, K), dtype=jnp.float32)     # depth_conv.weight
    db = 0.1 * jax.random.normal(kdb, (Cout,), dtype=jnp.float32)             # depth_conv.bias

    out = ssconv1_forward(x, gamma, beta, pw, dw, db)
    out = jax.block_until_ready(out)
    ref = ssconv1_reference(x, gamma, beta, pw, dw, db)
    assert out.shape == (N, Cout, H, W), out.shape
    assert jnp.allclose(out, ref, atol=1e-4, rtol=1e-4), float(jnp.max(jnp.abs(out - ref)))

    # Extra check exercising the sublane-batched path (B > 1, 2 grid steps).
    x_big = jax.random.normal(kx2, (8, Cin, H, W), dtype=jnp.float32)
    out_big = jax.block_until_ready(ssconv1_forward(x_big, gamma, beta, pw, dw, db))
    ref_big = ssconv1_reference(x_big, gamma, beta, pw, dw, db)
    assert jnp.allclose(out_big, ref_big, atol=1e-4, rtol=1e-4), \
        float(jnp.max(jnp.abs(out_big - ref_big)))

    print("KERNEL_OK")
</pallas_src>

<mosaic_0001>
module attributes {stable_mosaic.version = 11 : i64} {
  func.func @_ssconv1_kernel(%arg0: i32, %arg1: memref<1x4x256xf32, #tpu.memory_space<vmem>>, %arg2: memref<8x15xf32, #tpu.memory_space<vmem>>, %arg3: memref<9x256xf32, #tpu.memory_space<vmem>>, %arg4: memref<1x8x256xf32, #tpu.memory_space<vmem>>) attributes {dimension_semantics = [#tpu.dimension_semantics<parallel>], iteration_bounds = array<i64: 2>, scalar_prefetch = 0 : i64, scratch_operands = 0 : i64, tpu.core_type = #tpu.core_type<tc>, window_params = [{transform_indices = @transform_0, window_bounds = array<i64: 1, 4, 256>}, {pipeline_mode = #tpu.pipeline_mode<synchronous>, transform_indices = @transform_1, window_bounds = array<i64: 8, 15>}, {pipeline_mode = #tpu.pipeline_mode<synchronous>, transform_indices = @transform_2, window_bounds = array<i64: 9, 256>}, {transform_indices = @transform_3, window_bounds = array<i64: 1, 8, 256>}]} {
    %c0 = arith.constant 0 : index
    %c0_0 = arith.constant 0 : index
    %c0_1 = arith.constant 0 : index
    %0 = vector.load %arg1[%c0, %c0_0, %c0_1] : memref<1x4x256xf32, #tpu.memory_space<vmem>>, vector<1x4x256xf32>
    %1 = vector.shape_cast %0 : vector<1x4x256xf32> to vector<4x256xf32>
    %c0_2 = arith.constant 0 : index
    %c0_3 = arith.constant 0 : index
    %2 = vector.load %arg2[%c0_2, %c0_3] : memref<8x15xf32, #tpu.memory_space<vmem>>, vector<8x15xf32>
    %3 = vector.extract_strided_slice %2 {offsets = [0, 0], sizes = [8, 4], strides = [1, 1]} : vector<8x15xf32> to vector<8x4xf32>
    %4 = vector.extract_strided_slice %2 {offsets = [0, 4], sizes = [8, 1], strides = [1, 1]} : vector<8x15xf32> to vector<8x1xf32>
    %5 = vector.extract_strided_slice %2 {offsets = [0, 14], sizes = [8, 1], strides = [1, 1]} : vector<8x15xf32> to vector<8x1xf32>
    %cst = arith.constant dense<0.000000e+00> : vector<8x256xf32>
    %6 = tpu.matmul %3, %1, %cst {dimension_numbers = #tpu.dot_dimension_numbers<[1], [0], [0], [1], [0, 0, 1, 1], [], []>} : vector<8x4xf32>, vector<4x256xf32>, vector<8x256xf32> -> vector<8x256xf32>
    %7 = vector.broadcast %4 : vector<8x1xf32> to vector<8x256xf32>
    %8 = arith.addf %6, %7 : vector<8x256xf32>
    %cst_4 = arith.constant 0.000000e+00 : f32
    %9 = vector.broadcast %cst_4 : f32 to vector<8x256xf32>
    %10 = arith.cmpf oge, %8, %9 : vector<8x256xf32>
    %cst_5 = arith.constant 0.00999999977 : f32
    %11 = vector.broadcast %cst_5 : f32 to vector<8x256xf32>
    %12 = arith.mulf %11, %8 : vector<8x256xf32>
    %13 = arith.select %10, %8, %12 : vector<8x256xi1>, vector<8x256xf32>
    %c17_i32 = arith.constant 17 : i32
    %14 = tpu.dynamic_rotate %13 by %c17_i32 dim 1 : vector<8x256xf32>, i32 -> vector<8x256xf32>
    %c0_6 = arith.constant 0 : index
    %c0_7 = arith.constant 0 : index
    %15 = vector.load %arg3[%c0_6, %c0_7] : memref<9x256xf32, #tpu.memory_space<vmem>>, vector<1x256xf32>
    %16 = vector.broadcast %15 : vector<1x256xf32> to vector<8x256xf32>
    %17 = arith.mulf %14, %16 : vector<8x256xf32>
    %18 = vector.extract_strided_slice %2 {offsets = [0, 5], sizes = [8, 1], strides = [1, 1]} : vector<8x15xf32> to vector<8x1xf32>
    %19 = vector.broadcast %18 : vector<8x1xf32> to vector<8x256xf32>
    %20 = arith.mulf %17, %19 : vector<8x256xf32>
    %c16_i32 = arith.constant 16 : i32
    %21 = tpu.dynamic_rotate %13 by %c16_i32 dim 1 : vector<8x256xf32>, i32 -> vector<8x256xf32>
    %c1 = arith.constant 1 : index
    %c0_8 = arith.constant 0 : index
    %22 = vector.load %arg3[%c1, %c0_8] : memref<9x256xf32, #tpu.memory_space<vmem>>, vector<1x256xf32>
    %23 = vector.broadcast %22 : vector<1x256xf32> to vector<8x256xf32>
    %24 = arith.mulf %21, %23 : vector<8x256xf32>
    %25 = vector.extract_strided_slice %2 {offsets = [0, 6], sizes = [8, 1], strides = [1, 1]} : vector<8x15xf32> to vector<8x1xf32>
    %26 = vector.broadcast %25 : vector<8x1xf32> to vector<8x256xf32>
    %27 = arith.mulf %24, %26 : vector<8x256xf32>
    %28 = arith.addf %20, %27 : vector<8x256xf32>
    %c15_i32 = arith.constant 15 : i32
    %29 = tpu.dynamic_rotate %13 by %c15_i32 dim 1 : vector<8x256xf32>, i32 -> vector<8x256xf32>
    %c2 = arith.constant 2 : index
    %c0_9 = arith.constant 0 : index
    %30 = vector.load %arg3[%c2, %c0_9] : memref<9x256xf32, #tpu.memory_space<vmem>>, vector<1x256xf32>
    %31 = vector.broadcast %30 : vector<1x256xf32> to vector<8x256xf32>
    %32 = arith.mulf %29, %31 : vector<8x256xf32>
    %33 = vector.extract_strided_slice %2 {offsets = [0, 7], sizes = [8, 1], strides = [1, 1]} : vector<8x15xf32> to vector<8x1xf32>
    %34 = vector.broadcast %33 : vector<8x1xf32> to vector<8x256xf32>
    %35 = arith.mulf %32, %34 : vector<8x256xf32>
    %36 = arith.addf %28, %35 : vector<8x256xf32>
    %c1_i32 = arith.constant 1 : i32
    %37 = tpu.dynamic_rotate %13 by %c1_i32 dim 1 : vector<8x256xf32>, i32 -> vector<8x256xf32>
    %c3 = arith.constant 3 : index
    %c0_10 = arith.constant 0 : index
    %38 = vector.load %arg3[%c3, %c0_10] : memref<9x256xf32, #tpu.memory_space<vmem>>, vector<1x256xf32>
    %39 = vector.broadcast %38 : vector<1x256xf32> to vector<8x256xf32>
    %40 = arith.mulf %37, %39 : vector<8x256xf32>
    %41 = vector.extract_strided_slice %2 {offsets = [0, 8], sizes = [8, 1], strides = [1, 1]} : vector<8x15xf32> to vector<8x1xf32>
    %42 = vector.broadcast %41 : vector<8x1xf32> to vector<8x256xf32>
    %43 = arith.mulf %40, %42 : vector<8x256xf32>
    %44 = arith.addf %36, %43 : vector<8x256xf32>
    %45 = vector.extract_strided_slice %2 {offsets = [0, 9], sizes = [8, 1], strides = [1, 1]} : vector<8x15xf32> to vector<8x1xf32>
    %46 = vector.broadcast %45 : vector<8x1xf32> to vector<8x256xf32>
    %47 = arith.mulf %13, %46 : vector<8x256xf32>
    %48 = arith.addf %44, %47 : vector<8x256xf32>
    %c255_i32 = arith.constant 255 : i32
    %49 = tpu.dynamic_rotate %13 by %c255_i32 dim 1 : vector<8x256xf32>, i32 -> vector<8x256xf32>
    %c5 = arith.constant 5 : index
    %c0_11 = arith.constant 0 : index
    %50 = vector.load %arg3[%c5, %c0_11] : memref<9x256xf32, #tpu.memory_space<vmem>>, vector<1x256xf32>
    %51 = vector.broadcast %50 : vector<1x256xf32> to vector<8x256xf32>
    %52 = arith.mulf %49, %51 : vector<8x256xf32>
    %53 = vector.extract_strided_slice %2 {offsets = [0, 10], sizes = [8, 1], strides = [1, 1]} : vector<8x15xf32> to vector<8x1xf32>
    %54 = vector.broadcast %53 : vector<8x1xf32> to vector<8x256xf32>
    %55 = arith.mulf %52, %54 : vector<8x256xf32>
    %56 = arith.addf %48, %55 : vector<8x256xf32>
    %c241_i32 = arith.constant 241 : i32
    %57 = tpu.dynamic_rotate %13 by %c241_i32 dim 1 : vector<8x256xf32>, i32 -> vector<8x256xf32>
    %c6 = arith.constant 6 : index
    %c0_12 = arith.constant 0 : index
    %58 = vector.load %arg3[%c6, %c0_12] : memref<9x256xf32, #tpu.memory_space<vmem>>, vector<1x256xf32>
    %59 = vector.broadcast %58 : vector<1x256xf32> to vector<8x256xf32>
    %60 = arith.mulf %57, %59 : vector<8x256xf32>
    %61 = vector.extract_strided_slice %2 {offsets = [0, 11], sizes = [8, 1], strides = [1, 1]} : vector<8x15xf32> to vector<8x1xf32>
    %62 = vector.broadcast %61 : vector<8x1xf32> to vector<8x256xf32>
    %63 = arith.mulf %60, %62 : vector<8x256xf32>
    %64 = arith.addf %56, %63 : vector<8x256xf32>
    %c240_i32 = arith.constant 240 : i32
    %65 = tpu.dynamic_rotate %13 by %c240_i32 dim 1 : vector<8x256xf32>, i32 -> vector<8x256xf32>
    %c7 = arith.constant 7 : index
    %c0_13 = arith.constant 0 : index
    %66 = vector.load %arg3[%c7, %c0_13] : memref<9x256xf32, #tpu.memory_space<vmem>>, vector<1x256xf32>
    %67 = vector.broadcast %66 : vector<1x256xf32> to vector<8x256xf32>
    %68 = arith.mulf %65, %67 : vector<8x256xf32>
    %69 = vector.extract_strided_slice %2 {offsets = [0, 12], sizes = [8, 1], strides = [1, 1]} : vector<8x15xf32> to vector<8x1xf32>
    %70 = vector.broadcast %69 : vector<8x1xf32> to vector<8x256xf32>
    %71 = arith.mulf %68, %70 : vector<8x256xf32>
    %72 = arith.addf %64, %71 : vector<8x256xf32>
    %c239_i32 = arith.constant 239 : i32
    %73 = tpu.dynamic_rotate %13 by %c239_i32 dim 1 : vector<8x256xf32>, i32 -> vector<8x256xf32>
    %c8 = arith.constant 8 : index
    %c0_14 = arith.constant 0 : index
    %74 = vector.load %arg3[%c8, %c0_14] : memref<9x256xf32, #tpu.memory_space<vmem>>, vector<1x256xf32>
    %75 = vector.broadcast %74 : vector<1x256xf32> to vector<8x256xf32>
    %76 = arith.mulf %73, %75 : vector<8x256xf32>
    %77 = vector.extract_strided_slice %2 {offsets = [0, 13], sizes = [8, 1], strides = [1, 1]} : vector<8x15xf32> to vector<8x1xf32>
    %78 = vector.broadcast %77 : vector<8x1xf32> to vector<8x256xf32>
    %79 = arith.mulf %76, %78 : vector<8x256xf32>
    %80 = arith.addf %72, %79 : vector<8x256xf32>
    %81 = vector.broadcast %5 : vector<8x1xf32> to vector<8x256xf32>
    %82 = arith.addf %80, %81 : vector<8x256xf32>
    %cst_15 = arith.constant 0.000000e+00 : f32
    %83 = vector.broadcast %cst_15 : f32 to vector<8x256xf32>
    %84 = arith.cmpf oge, %82, %83 : vector<8x256xf32>
    %cst_16 = arith.constant 0.00999999977 : f32
    %85 = vector.broadcast %cst_16 : f32 to vector<8x256xf32>
    %86 = arith.mulf %85, %82 : vector<8x256xf32>
    %87 = arith.select %84, %82, %86 : vector<8x256xi1>, vector<8x256xf32>
    %c0_17 = arith.constant 0 : index
    %c0_18 = arith.constant 0 : index
    %c0_19 = arith.constant 0 : index
    %88 = vector.load %arg4[%c0_17, %c0_18, %c0_19] : memref<1x8x256xf32, #tpu.memory_space<vmem>>, vector<1x8x256xf32>
    %89 = vector.shape_cast %88 : vector<1x8x256xf32> to vector<8x256xf32>
    %90 = vector.shape_cast %87 : vector<8x256xf32> to vector<1x8x256xf32>
    tpu.vector_store %arg4[%c0_17, %c0_18, %c0_19], %90 {strides = array<i32>} : memref<1x8x256xf32, #tpu.memory_space<vmem>>, vector<1x8x256xf32>,
    return
  }
  func.func @transform_0(%arg0: i32) -> (i32, i32, i32) {
    %c0_i32 = arith.constant 0 : i32
    %c0_i32_0 = arith.constant 0 : i32
    %c0_i32_1 = arith.constant 0 : i32
    return %arg0, %c0_i32, %c0_i32_0 : i32, i32, i32
  }
  func.func @transform_1(%arg0: i32) -> (i32, i32) {
    %c0_i32 = arith.constant 0 : i32
    %c0_i32_0 = arith.constant 0 : i32
    %c0_i32_1 = arith.constant 0 : i32
    return %c0_i32, %c0_i32_0 : i32, i32
  }
  func.func @transform_2(%arg0: i32) -> (i32, i32) {
    %c0_i32 = arith.constant 0 : i32
    %c0_i32_0 = arith.constant 0 : i32
    %c0_i32_1 = arith.constant 0 : i32
    return %c0_i32, %c0_i32_0 : i32, i32
  }
  func.func @transform_3(%arg0: i32) -> (i32, i32, i32) {
    %c0_i32 = arith.constant 0 : i32
    %c0_i32_0 = arith.constant 0 : i32
    %c0_i32_1 = arith.constant 0 : i32
    return %arg0, %c0_i32, %c0_i32_0 : i32, i32, i32
  }
}

</mosaic_0001>

<bundles_post_ra>
// kernel: tpu_custom_call.1
= control target key start
LH: loop header
LB: loop body
LE: loop exit
PB: predicated region body
PF: predicated region fallthrough
CT: control target
= control target key end

     0   :  { %8 = vsyncpa [#allocation3], 0  ;;  %s1263_s0 = inlined_call_operand.hbm [shape: f32[2,4,256], index: 0, kind: input, shape index: {}]   ;;  %s1264_s1 = inlined_call_operand.hbm [shape: f32[8,15], index: 1, kind: input, shape index: {}]   ;;  %s1265_s2 = inlined_call_operand.hbm [shape: f32[9,256], index: 2, kind: input, shape index: {}]   ;;  %s1266_s3 = inlined_call_operand.hbm [shape: f32[2,8,256], index: 3, kind: output, shape index: {}]  }
   0x1   :  { %10 = vsyncpa [#allocation3 + $0x1], 0 }
   0x2   :  { %11 = vsyncpa [#allocation6], 0 }
   0x3   :  { %12 = vsyncpa [#allocation4], 0 }
   0x4   :  { %14 = vsyncpa [#allocation4 + $0x1], 0  ;;  %s993_s12 = smov 0   ;;  %s995_s13 = smov 0  }
   0x5   :  { %s997_s14 = smov 0   ;;  %s999_s15 = smov 0  }
   0x6 LB: > { %s1014_s16 = sadd.s32 4294967295, %s945_s15   ;;  %s673_s17 = sadd.s32 4294967294, %s945_s15   ;;  %s945_s15 = sphi %s999_s15, %s1288_s15   ;;  %s941_s14 = sphi %s997_s14, %s1287_s14   ;;  %s937_s13 = sphi %s995_s13, %s1286_s13   ;;  %s933_s12 = sphi %s993_s12, %s1285_s12  }
   0x7   : > { %p40_p0 = scmp.ne.s32.totalorder %s937_s13, %s933_s12  ;;  %p1267_p1 = scmp.eq.s32.totalorder %s1014_s16, 0 }
   0x8   : > { %p112_p3 = scmp.eq.s32.totalorder %s673_s17, 1  ;;  %p674_p5 = scmp.ge.s32.totalorder %s945_s15, 1 }
   0x9   : > { %p1023_p4 = por %p1267_p1, %p40_p0  ;;  %p119_p7 = scmp.lt.s32.totalorder %s945_s15, 3 }
   0xa   : > { %p1028_p6 = por %p112_p3, %p40_p0  ;;  %s947_s21 = smov [#allocation5]  }
   0xb   : > { %s1271_s18 = scalar_select %p1023_p4, 1, 0 }
   0xc   : > { %s1272_s19 = scalar_select %p1028_p6, 1, 0 }
   0xd   : > { %p1033_p8 = pnand %p674_p5, %p119_p7  ;;  %s132_s22 = sshll.u32 %s947_s21, 4  ;;  %s133_s22 = int_to_ptr.vmem [resolvable:$true] %s132_s22 }
   0xe   : > { %s948_s23 = smov [#allocation7]   ;;  %s808_s26 = scalar_lea.vmem %s133_s22, 128 }
   0xf   : > { %s1273_s20 = scalar_select %p1033_p8, 1, 0 }
  0x10   : > { %p708_p10 = pneg %p1033_p8  ;;  %s142_s24 = sshll.u32 %s948_s23, 4  ;;  %s143_s24 = int_to_ptr.vmem [resolvable:$true] %s142_s24 }
  0x11   : > { %p809_p13 = scmp.ne.s32.totalorder %s133_s22, %s808_s26  ;;  %p816_p5 = scmp.lt.s32.totalorder %s133_s22, %s133_s22 }
  0x12   : > { %p1042_p11 = pnand %p708_p10, %p1267_p1  ;;  %p817_p7 = scmp.lt.s32.totalorder %s808_s26, %s808_s26 }
  0x14   : > { %p799_p12 = pneg %p1042_p11  ;;  %p818_p9 = por %p817_p7, %p816_p5 }
  0x16   : > { %p811_p0 = pnand %p809_p13, %p799_p12 }
  0x18   : > { %p812_p3 = pneg %p811_p0 }
  0x1a   : > { %p819_p2 = pnand %p818_p9, %p812_p3 }
  0x1c   : > { %822 = shalt.err (!%p819_p2)
}
  0x1d   : > { %711 = dma.hbm_to_vmem [thread:$0]  (!%p1042_p11), %s1264_s1, 128, %s133_s22, [#allocation6]  }
  0x1e   : > { %s834_s29 = scalar_lea.vmem %s143_s24, 512  ;;  %p842_p13 = scmp.lt.s32.totalorder %s143_s24, %s143_s24 }
  0x1f   : > { %p835_p10 = scmp.ne.s32.totalorder %s143_s24, %s834_s29  ;;  %p843_p0 = scmp.lt.s32.totalorder %s834_s29, %s834_s29 }
  0x21   : > { %p837_p1 = pnand %p835_p10, %p799_p12  ;;  %p844_p4 = por %p843_p0, %p842_p13 }
  0x23   : > { %p838_p6 = pneg %p837_p1 }
  0x25   : > { %p845_p8 = pnand %p844_p4, %p838_p6 }
  0x27   : > { %848 = shalt.err (!%p845_p8)
}
  0x28   : > { %s949_s30 = smov 256   ;;  %s950_s4 = smov 16  }
  0x29   : > { %714 = dma.hbm_to_vmem [thread:$0]  (!%p1042_p11), %s1265_s2, 512, %s143_s24, [#allocation6], %s949_s30, %s949_s30, %s950_s4  }
  0x2a   : > { %s1065_s7 = sadd.s32 1, %s945_s15   ;;  %s27_s8 = sadd.s32 1, %s941_s14 }
  0x2b   : > { %s24_s9 = ssub.s32 %s945_s15, %s1065_s7  ;;  %p34_p1 = scmp.ne.s32.totalorder %s941_s14, %s937_s13 }
  0x2c   : > { %p25_p2 = scmp.eq.s32.totalorder %s24_s9, 0  ;;  %p35_p4 = scmp.eq.s32.totalorder %s945_s15, 0 }
  0x2d   : > { %p1275_p6 = scmp.eq.s32.totalorder %s1014_s16, 1  ;;  %p725_p9 = scmp.lt.s32.totalorder %s945_s15, 2 }
  0x2e   : > { %s1081_s11 = scalar_select %p25_p2, %s941_s14, %s27_s8  }
  0x2f   : > { %p1075_p8 = por %p1275_p6, %p34_p1  ;;  %p36_p12 = por %p35_p4, %p34_p1 }
  0x30   : > { %s156_s17 = sand.u32 1, %s941_s14   ;;  %s694_s22 = sshll.u32 %s945_s15, 7 }
  0x31   : > { %s1276_s10 = scalar_select %p1075_p8, 1, 0 }
  0x32   : > { %s678_s21 = sshll.u32 %s156_s17, 3  ;;  %s1088_s25 = scalar_lea.hbm %s1263_s0, %s694_s22 }
  0x33   : > { %s160_s26 = scalar_lea.vmem [#allocation2], %s678_s21  ;;  %p1090_p11 = pnand %p725_p9, %p36_p12 }
  0x34   : > { %s168_s27 = sshll.u32 %s160_s26, 4  ;;  %s157_s29 = scalar_lea.sflag [#allocation3], %s156_s17  ;;  %s169_s27 = int_to_ptr.vmem [resolvable:$true] %s168_s27 }
  0x35   : > { %s849_s30 = scalar_lea.hbm %s1088_s25, 128  ;;  %p851_p5 = pneg %p1090_p11 }
  0x36   : > { %p850_p3 = scmp.ne.s32.totalorder %s1088_s25, %s849_s30  ;;  %s854_s6 = scalar_lea.hbm %s1263_s0, 256 }
  0x37   : > { %p855_p13 = scmp.lt.s32.totalorder %s1088_s25, %s1263_s0  ;;  %p856_p0 = scmp.lt.s32.totalorder %s854_s6, %s849_s30 }
  0x38   : > { %p852_p7 = pnand %p851_p5, %p850_p3 }
  0x39   : > { %p857_p1 = por %p856_p0, %p855_p13 }
  0x3a   : > { %p853_p10 = pneg %p852_p7 }
  0x3c   : > { %p858_p2 = pnand %p857_p1, %p853_p10 }
  0x3e   : > { %861 = shalt.err (!%p858_p2)
}
  0x3f   : > { %s862_s21 = scalar_lea.vmem %s169_s27, 128  ;;  %s951_s17 = smov [#allocation2]  }
  0x40   : > { %p863_p4 = scmp.ne.s32.totalorder %s169_s27, %s862_s21  ;;  %s867_s22 = sshll.u32 %s951_s17, 4  ;;  %s868_s22 = int_to_ptr.vmem [resolvable:$false] %s867_s22 }
  0x41   : > { %s869_s23 = scalar_lea.vmem %s868_s22, 256  ;;  %p870_p12 = scmp.lt.s32.totalorder %s169_s27, %s868_s22 }
  0x42   : > { %p865_p6 = pnand %p863_p4, %p851_p5  ;;  %p871_p3 = scmp.lt.s32.totalorder %s869_s23, %s862_s21 }
  0x44   : > { %p866_p9 = pneg %p865_p6  ;;  %p872_p7 = por %p871_p3, %p870_p12 }
  0x46   : > { %p873_p8 = pnand %p872_p7, %p866_p9 }
  0x48   : > { %876 = shalt.err (!%p873_p8)
}
  0x49   : > { %718 = dma.hbm_to_vmem [thread:$0]  (!%p1090_p11), %s1088_s25, 128, %s169_s27, %s157_s29  }
  0x4a   : > { %p1278_p10 = scmp.ne.s32.totalorder %s1273_s20, 0 }
  0x4b   : > { %s1111_s24 = sand.u32 (!%p1278_p10), 1, %s937_s13   ;;  %p1279_p5 = scmp.ne.s32.totalorder (!%p1278_p10), %s1271_s18, 0 }
  0x4c   : > { %177 = sbr.rel (%p1278_p10) target bundleno = 476 (0x1dc), region = 32  ;;  %s682_s26 = sshll.u32 (!%p1278_p10), %s1111_s24, 3 }
  0x4d   : > { %s180_s30 = scalar_lea.sflag (!%p1278_p10), [#allocation3], %s1111_s24  ;;  %s183_s4 = scalar_lea.vmem (!%p1278_p10), [#allocation2], %s682_s26 }
  0x51   : > { %920 = dma.done.wait (%p1279_p5), %s180_s30, 128  }
  0x52   : > { %922 = vsyncadd (%p1279_p5), %s180_s30, 4294967168  ;;  %p1280_p8 = scmp.eq.s32.totalorder %s1014_s16, 0 }
  0x54   : > { %924 = dma.done.wait (%p1280_p8), [#allocation6], 640   ;;  %p1281_p11 = pmov %p1280_p8 }
  0x55   : > { %v952_v0 = vmov 0.0   ;;  %v953_v1 = vmov 4   ;;  %v954_v2 = vmov 6   ;;  %v214_v3 = vld [vmem:[%s183_s4] sm:$0xff]  ;;  %vm226_vm0 = vcmask 1043456   ;;  %v215_v4 = vld [vmem:[#allocation5] sm:$0xff] }
  0x56   : > { %926 = vsyncadd (%p1281_p11), [#allocation6], 4294966656  ;;  %295 = vmatprep.mubr.f32.mxu0 %v952_v0  ;;  %785 = vset.pattern.permute.xlu0 %v953_v1  ;;  %v222_v5 = vcombine.high %v214_v3, %v214_v3  ;;  %vm223_vm1 = vcmask 31744   ;;  %v955_v6 = vmov 5   ;;  %v956_v7 = vmov 10   ;;  %s963_s18 = smov 16  }
  0x57   : > { %787 = vset.pattern.permute.xlu1 %v954_v2  ;;  %218 = vperm.xlu0 %785, %v215_v4   ;;  %v957_v8 = vmov 7   ;;  %v958_v9 = vmov 11   ;;  %v959_v10 = vmov 8   ;;  %v960_v11 = vmov 9   ;;  %s964_s20 = smov 17   ;;  %s965_s25 = smov 113  }
  0x58   : > { %360 = vperm.xlu1 %787, %v215_v4   ;;  %686 = vmatprep.subr.msk.mxu0 %vm226_vm0, %v222_v5  ;;  %v961_v12 = vmov 12   ;;  %v962_v13 = vmov 13   ;;  %s966_s27 = smov 15   ;;  %s967_s28 = smov 127   ;;  %v970_v23 = vmov 14   ;;  %v312_v35 = vlaneseq }
  0x59   : > { %687 = vmatpush1.msk.msra.mxu0 %vm226_vm0, %v214_v3  ;;  %s968_s29 = smov 1   ;;  %s969_s5 = smov 112   ;;  %v317_v41 = vld [vmem:[#allocation7] ss:$8 sm:$0x3] }
  0x5a   : > { %688 = vmatmul.mubr.msk.f32.vlgmr.msra.gmra.mxu0 %vm223_vm1, %v215_v4  ;;  %s971_s6 = smov 111   ;;  %v320_v38 = vshrl.u32 %v312_v35, 7  ;;  %v1155_v39 = vand.u32 127, %v312_v35  ;;  %v345_v42 = vld [vmem:[#allocation7 + $0x1] ss:$8 sm:$0x3] }
  0x5b   : > { %786 = vset.pattern.permute.xlu0 %v955_v6  ;;  %v375_v45 = vld [vmem:[#allocation7 + $0x2] ss:$8 sm:$0x3]  ;;  %v405_v58 = vld [vmem:[#allocation7 + $0x3] ss:$8 sm:$0x3] }
  0x5c   : > { %332 = vperm.xlu0 %786, %v215_v4   ;;  %791 = vset.pattern.permute.xlu1 %v956_v7  ;;  %v1157_v43 = vsub.s32 0, %v320_v38  ;;  %v1159_v44 = vsub.s32 1, %v320_v38  ;;  %vm341_vm4 = vcmp.lt.s32.totalorder %v1155_v39, 16  ;;  %vm314_vm5 = vcmp.lt.s32.totalorder %v1155_v39, 17  ;;  %s685_s8 = sshll.u32 %s1111_s24, 4  ;;  %s695_s9 = sshll.u32 %s1014_s16, 8 }
  0x5d   : > { %458 = vperm.xlu1 %791, %v215_v4   ;;  %vm371_vm6 = vcmp.lt.s32.totalorder %v1155_v39, 15  ;;  %vm401_vm7 = vcmp.lt.s32.totalorder %v1155_v39, 1  ;;  %v443_v7 = vld [vmem:[#allocation7 + $0x5] ss:$8 sm:$0x3]  ;;  %vm439_vm8 = vcmp.lt.s32.totalorder %v1155_v39, 127  ;;  %s1220_s26 = scalar_lea.hbm %s1266_s3, %s695_s9 }
  0x5e   : > { %v322_v47 = vrot.slane %v317_v41, %v1157_v43  ;;  %v350_v48 = vrot.slane %v345_v42, %v1157_v43  ;;  %v354_v49 = vrot.slane %v345_v42, %v1159_v44  ;;  %v326_v51 = vrot.slane %v317_v41, %v1159_v44  ;;  %s213_s21 = scalar_lea.vmem [#allocation8], %s685_s8  ;;  %s570_s16 = scalar_lea.sflag [#allocation4], %s1111_s24 }
  0x5f   : > { %v380_v56 = vrot.slane %v375_v45, %v1157_v43  ;;  %v384_v57 = vrot.slane %v375_v45, %v1159_v44  ;;  %v414_v5 = vrot.slane %v405_v58, %v1159_v44  ;;  %v452_v38 = vrot.slane %v443_v7, %v1159_v44  ;;  %s584_s17 = sshll.u32 %s213_s21, 4  ;;  %p1282_p0 = scmp.ne.s32.totalorder %s1276_s10, 0  ;;  %s1222_s17 = int_to_ptr.vmem [resolvable:$true] %s584_s17 }
  0x60   : > { %788 = vset.pattern.permute.xlu0 %v957_v8  ;;  %vm469_vm9 = vcmp.lt.s32.totalorder %v1155_v39, 113  ;;  %vm499_vm10 = vcmp.lt.s32.totalorder %v1155_v39, 112  ;;  %vm529_vm11 = vcmp.lt.s32.totalorder %v1155_v39, 111  ;;  %s877_s30 = scalar_lea.vmem %s1222_s17, 256  ;;  %s972_s4 = smov [#allocation8]  }
  0x61   : > { %390 = vperm.xlu0 %788, %v215_v4   ;;  %792 = vset.pattern.permute.xlu1 %v958_v9  ;;  %p878_p13 = scmp.ne.s32.totalorder %s1222_s17, %s877_s30 }
  0x62   : > { %488 = vperm.xlu1 %792, %v215_v4  }
  0x63   : > { %p879_p1 = pnand %p878_p13, %p1282_p0 }
  0x65   : > { %789 = vset.pattern.permute.xlu0 %v959_v10  ;;  %p880_p2 = pneg %p879_p1 }
  0x66   : > { %420 = vperm.xlu0 %789, %v215_v4  }
  0x6a   : > { %790 = vset.pattern.permute.xlu0 %v960_v11 }
  0x6b   : > { %428 = vperm.xlu0 %790, %v215_v4  }
  0x6f   : > { %793 = vset.pattern.permute.xlu0 %v961_v12 }
  0x70   : > { %518 = vperm.xlu0 %793, %v215_v4  }
  0x74   : > { %794 = vset.pattern.permute.xlu0 %v962_v13 }
  0xd2   : > { %v219_v14 = vpop.permute.xlu0 %218 }
  0xd3   : > { %v361_v24 = vpop.permute.xlu1 %360 }
  0xd7   : > { %v333_v27 = vpop.permute.xlu0 %332 }
  0xd8   : > { %v1143_v25 = vpop.permute.xlu1 %458 }
  0xdc   : > { %v391_v29 = vpop.permute.xlu0 %390 }
  0xdd   : > { %v1145_v26 = vpop.permute.xlu1 %488 }
  0xe1   : > { %v421_v31 = vpop.permute.xlu0 %420 }
  0xe6   : > { %v1149_v34 = vpop.permute.xlu0 %428 }
  0xeb   : > { %v1153_v37 = vpop.permute.xlu0 %518 }
 0x11a   : > { %v297_v15 = vpop.f32.mrf.mxu0 }
 0x11b   : > { %v298_v16 = vadd.f32 %v297_v15, %v219_v14 }
 0x11c   : > { %v299_v17 = vpop.f32.mrf.mxu0 }
 0x11d   : > { %vm302_vm2 = vcmp.ge.f32.partialorder %v298_v16, 0.0  ;;  %v304_v18 = vmul.f32 0.01, %v298_v16  ;;  %v300_v20 = vadd.f32 %v299_v17, %v219_v14 }
 0x11f   : > { %v1123_v19 = vsel %vm302_vm2, %v298_v16, %v304_v18  ;;  %v305_v21 = vmul.f32 0.01, %v300_v20  ;;  %vm303_vm3 = vcmp.ge.f32.partialorder %v300_v20, 0.0 }
 0x120   : > { %337 = vrot.lane.b32.xlu0 %v1123_v19, %s963_s18  ;;  %308 = vrot.lane.b32.xlu1 %v1123_v19, %s964_s20 }
 0x121   : > { %v1129_v22 = vsel %vm303_vm3, %v300_v20, %v305_v21  ;;  %v473_v20 = vld [vmem:[#allocation7 + $0x6] ss:$8 sm:$0x3]  ;;  %v448_v21 = vrot.slane %v443_v7, %v1157_v43 }
 0x124   : > { %465 = vrot.lane.b32.xlu0 %v1123_v19, %s965_s25  ;;  %367 = vrot.lane.b32.xlu1 %v1123_v19, %s966_s27 }
 0x128   : > { %437 = vrot.lane.b32.xlu0 %v1129_v22, %s967_s28  ;;  %397 = vrot.lane.b32.xlu1 %v1123_v19, %s968_s29 }
 0x12c   : > { %435 = vrot.lane.b32.xlu1 %v1123_v19, %s967_s28  ;;  %548 = vperm.xlu0 %794, %v215_v4  }
 0x130   : > { %495 = vrot.lane.b32.xlu1 %v1123_v19, %s969_s5  ;;  %795 = vset.pattern.permute.xlu0 %v970_v23 }
 0x131   : > { %556 = vperm.xlu0 %795, %v215_v4   ;;  %v410_v4 = vrot.slane %v405_v58, %v1157_v43 }
 0x134   : > { %310 = vrot.lane.b32.xlu1 %v1129_v22, %s964_s20 }
 0x138   : > { %339 = vrot.lane.b32.xlu1 %v1129_v22, %s963_s18  ;;  %s881_s18 = sshll.u32 %s972_s4, 4  ;;  %s882_s18 = int_to_ptr.vmem [resolvable:$false] %s881_s18 }
 0x139   : > { %s883_s20 = scalar_lea.vmem %s882_s18, 512  ;;  %p884_p4 = scmp.lt.s32.totalorder %s1222_s17, %s882_s18 }
 0x13a   : > { %p885_p6 = scmp.lt.s32.totalorder %s883_s20, %s877_s30 }
 0x13c   : > { %369 = vrot.lane.b32.xlu1 %v1129_v22, %s966_s27  ;;  %p886_p9 = por %p885_p6, %p884_p4 }
 0x13e   : > { %p887_p12 = pnand %p886_p9, %p880_p2 }
 0x140   : > { %399 = vrot.lane.b32.xlu1 %v1129_v22, %s968_s29 }
 0x144   : > { %525 = vrot.lane.b32.xlu1 %v1123_v19, %s971_s6 }
 0x148   : > { %467 = vrot.lane.b32.xlu1 %v1129_v22, %s965_s25 }
 0x14c   : > { %497 = vrot.lane.b32.xlu1 %v1129_v22, %s969_s5 }
 0x150   : > { %527 = vrot.lane.b32.xlu1 %v1129_v22, %s971_s6 }
 0x192   : > { %v309_v28 = vpop.permute.xlu1 %308  ;;  %v338_v46 = vpop.permute.xlu0 %337 }
 0x196   : > { %v368_v30 = vpop.permute.xlu1 %367  ;;  %v466_v6 = vpop.permute.xlu0 %465 }
 0x19a   : > { %v398_v32 = vpop.permute.xlu1 %397  ;;  %v438_v35 = vpop.permute.xlu0 %437 }
 0x19e   : > { %v1147_v33 = vpop.permute.xlu1 %435 }
 0x19f   : > { %v441_v41 = vsel %vm439_vm8, %v438_v35, %v1147_v33 }
 0x1a2   : > { %v1151_v36 = vpop.permute.xlu1 %495 }
 0x1a6   : > { %v311_v40 = vpop.permute.xlu1 %310 }
 0x1a7   : > { %v315_v54 = vsel %vm314_vm5, %v309_v28, %v311_v40  ;;  %v316_v55 = vsel %vm314_vm5, %v311_v40, %v309_v28  ;;  %v440_v40 = vsel %vm439_vm8, %v1147_v33, %v438_v35 }
 0x1a8   : > { %v329_v62 = vmul.f32 %v322_v47, %v316_v55  ;;  %v330_v63 = vmul.f32 %v326_v51, %v315_v54  ;;  %v432_v47 = vmul.f32 %v1149_v34, %v1129_v22  ;;  %v455_v51 = vmul.f32 %v448_v21, %v440_v40  ;;  %v533_v54 = vld [vmem:[#allocation7 + $0x10] ss:$8 sm:$0x3] }
 0x1aa   : > { %v340_v50 = vpop.permute.xlu1 %339  ;;  %v335_v11 = vmul.f32 %v333_v27, %v329_v62  ;;  %v336_v12 = vmul.f32 %v333_v27, %v330_v63 }
 0x1ab   : > { %v342_v52 = vsel %vm341_vm4, %v338_v46, %v340_v50  ;;  %v343_v53 = vsel %vm341_vm4, %v340_v50, %v338_v46  ;;  %v431_v46 = vmul.f32 %v1149_v34, %v1123_v19 }
 0x1ac   : > { %v357_v59 = vmul.f32 %v350_v48, %v343_v53  ;;  %v358_v60 = vmul.f32 %v354_v49, %v342_v52  ;;  %v456_v52 = vmul.f32 %v452_v38, %v441_v41 }
 0x1ae   : > { %v370_v61 = vpop.permute.xlu1 %369  ;;  %v363_v8 = vmul.f32 %v361_v24, %v357_v59  ;;  %v364_v9 = vmul.f32 %v361_v24, %v358_v60  ;;  %v538_v59 = vrot.slane %v533_v54, %v1157_v43  ;;  %v542_v60 = vrot.slane %v533_v54, %v1159_v44 }
 0x1af   : > { %v372_v0 = vsel %vm371_vm6, %v368_v30, %v370_v61  ;;  %v373_v1 = vsel %vm371_vm6, %v370_v61, %v368_v30  ;;  %v461_v61 = vmul.f32 %v1143_v25, %v455_v51  ;;  %v462_v62 = vmul.f32 %v1143_v25, %v456_v52 }
 0x1b0   : > { %v387_v2 = vmul.f32 %v380_v56, %v373_v1  ;;  %v388_v3 = vmul.f32 %v384_v57, %v372_v0  ;;  %v365_v23 = vadd.f32 %v363_v8, %v335_v11  ;;  %v366_v24 = vadd.f32 %v364_v9, %v336_v12 }
 0x1b2   : > { %v400_v10 = vpop.permute.xlu1 %399  ;;  %v393_v15 = vmul.f32 %v391_v29, %v387_v2  ;;  %v394_v16 = vmul.f32 %v391_v29, %v388_v3  ;;  %v482_v29 = vrot.slane %v473_v20, %v1159_v44 }
 0x1b3   : > { %v402_v13 = vsel %vm401_vm7, %v398_v32, %v400_v10  ;;  %v403_v14 = vsel %vm401_vm7, %v400_v10, %v398_v32  ;;  %v478_v32 = vrot.slane %v473_v20, %v1157_v43 }
 0x1b4   : > { %v417_v17 = vmul.f32 %v410_v4, %v403_v14  ;;  %v418_v18 = vmul.f32 %v414_v5, %v402_v13  ;;  %v395_v42 = vadd.f32 %v393_v15, %v365_v23  ;;  %v396_v45 = vadd.f32 %v394_v16, %v366_v24 }
 0x1b6   : > { %v423_v28 = vmul.f32 %v421_v31, %v417_v17  ;;  %v424_v30 = vmul.f32 %v421_v31, %v418_v18  ;;  %v526_v27 = vpop.permute.xlu1 %525  ;;  %v503_v31 = vld [vmem:[#allocation7 + $0x7] ss:$8 sm:$0x3] }
 0x1b7   : > { %v508_v56 = vrot.slane %v503_v31, %v1157_v43  ;;  %v512_v22 = vrot.slane %v503_v31, %v1159_v44  ;;  %v549_v44 = vpop.permute.xlu0 %548 }
 0x1b8   : > { %v425_v48 = vadd.f32 %v423_v28, %v395_v42  ;;  %v426_v49 = vadd.f32 %v424_v30, %v396_v45 }
 0x1ba   : > { %v468_v50 = vpop.permute.xlu1 %467  ;;  %v433_v34 = vadd.f32 %v431_v46, %v425_v48  ;;  %v434_v57 = vadd.f32 %v432_v47, %v426_v49 }
 0x1bb   : > { %v470_v53 = vsel %vm469_vm9, %v466_v6, %v468_v50  ;;  %v471_v33 = vsel %vm469_vm9, %v468_v50, %v466_v6 }
 0x1bc   : > { %v485_v55 = vmul.f32 %v478_v32, %v470_v53  ;;  %v486_v19 = vmul.f32 %v482_v29, %v471_v33  ;;  %v463_v6 = vadd.f32 %v461_v61, %v433_v34  ;;  %v464_v7 = vadd.f32 %v462_v62, %v434_v57 }
 0x1be   : > { %v498_v58 = vpop.permute.xlu1 %497  ;;  %v491_v1 = vmul.f32 %v1145_v26, %v485_v55  ;;  %v492_v2 = vmul.f32 %v1145_v26, %v486_v19 }
 0x1bf   : > { %v500_v63 = vsel %vm499_vm10, %v1151_v36, %v498_v58  ;;  %v501_v0 = vsel %vm499_vm10, %v498_v58, %v1151_v36 }
 0x1c0   : > { %v515_v43 = vmul.f32 %v508_v56, %v500_v63  ;;  %v516_v3 = vmul.f32 %v512_v22, %v501_v0  ;;  %v493_v26 = vadd.f32 %v491_v1, %v463_v6  ;;  %v494_v11 = vadd.f32 %v492_v2, %v464_v7 }
 0x1c2   : > { %v521_v4 = vmul.f32 %v1153_v37, %v515_v43  ;;  %v522_v25 = vmul.f32 %v1153_v37, %v516_v3  ;;  %v528_v5 = vpop.permute.xlu1 %527  ;;  %v557_v37 = vpop.permute.xlu0 %556 }
 0x1c3   : > { %v530_v8 = vsel %vm529_vm11, %v526_v27, %v528_v5  ;;  %v531_v36 = vsel %vm529_vm11, %v528_v5, %v526_v27 }
 0x1c4   : > { %v545_v9 = vmul.f32 %v538_v59, %v530_v8  ;;  %v546_v10 = vmul.f32 %v542_v60, %v531_v36  ;;  %v523_v14 = vadd.f32 %v521_v4, %v493_v26  ;;  %v524_v15 = vadd.f32 %v522_v25, %v494_v11 }
 0x1c6   : > { %v551_v12 = vmul.f32 %v549_v44, %v545_v9  ;;  %v552_v13 = vmul.f32 %v549_v44, %v546_v10 }
 0x1c8   : > { %v553_v16 = vadd.f32 %v551_v12, %v523_v14  ;;  %v554_v17 = vadd.f32 %v552_v13, %v524_v15 }
 0x1ca   : > { %v559_v18 = vadd.f32 %v557_v37, %v553_v16  ;;  %v560_v20 = vadd.f32 %v557_v37, %v554_v17 }
 0x1cc   : > { %vm561_vm12 = vcmp.ge.f32.partialorder %v559_v18, 0.0  ;;  %vm562_vm13 = vcmp.ge.f32.partialorder %v560_v20, 0.0  ;;  %v563_v39 = vmul.f32 0.01, %v559_v18  ;;  %v564_v21 = vmul.f32 0.01, %v560_v20 }
 0x1ce   : > { %v565_v23 = vsel %vm561_vm12, %v559_v18, %v563_v39  ;;  %v566_v24 = vsel %vm562_vm13, %v560_v20, %v564_v21 }
 0x1cf   : > { %567 = vst [vmem:[%s213_s21] sm:$0xff] %v565_v23  ;;  %568 = vst [vmem:[%s213_s21 + $0x8] sm:$0xff] %v566_v24 }
 0x1d0   : > { %890 = shalt.err (!%p887_p12)
}
 0x1d1   : > { %s891_s25 = scalar_lea.hbm %s1220_s26, 256  ;;  %s895_s28 = scalar_lea.hbm %s1266_s3, 512 }
 0x1d2   : > { %p892_p3 = scmp.ne.s32.totalorder %s1220_s26, %s891_s25  ;;  %p896_p5 = scmp.lt.s32.totalorder %s1220_s26, %s1266_s3 }
 0x1d3   : > { %p897_p8 = scmp.lt.s32.totalorder %s895_s28, %s891_s25 }
 0x1d4   : > { %p893_p7 = pnand %p892_p3, %p1282_p0 }
 0x1d5   : > { %p898_p11 = por %p897_p8, %p896_p5 }
 0x1d6   : > { %p894_p10 = pneg %p893_p7 }
 0x1d8   : > { %p899_p13 = pnand %p898_p11, %p894_p10 }
 0x1da   : > { %902 = shalt.err (!%p899_p13)
}
 0x1db   : > { %706 = dma.vmem_to_hbm [thread:$0]  (%p1282_p0), %s1222_s17, 256, %s1220_s26, %s570_s16  }
 0x1dc PF: > { %s596_s6 = sand.u32 1, %s933_s12   ;;  %p1283_p1 = scmp.ne.s32.totalorder %s1272_s19, 0 }
 0x1dd   : > { %p1284_p2 = scmp.ge.s32.totalorder %s945_s15, 2  ;;  %s597_s8 = scalar_lea.sflag [#allocation4], %s596_s6 }
 0x1df   : > { %p720_p4 = pnand %p1284_p2, %p1283_p1 }
 0x1e1   : > { %p721_p6 = pneg %p720_p4 }
 0x1e3   : > { %928 = dma.done.wait (%p721_p6), %s597_s8, 256  }
 0x1e4   : > { %930 = vsyncadd (%p721_p6), %s597_s8, 4294967040  ;;  %p17_p9 = scmp.ge.s32.totalorder %s1065_s7, 4   ;;  %s1285_s12 = smov %s937_s13 }
 0x1e5   : > { %s1286_s13 = smov %s941_s14  ;;  %s1287_s14 = smov %s1081_s11 }
 0x1e6   : > { %s1288_s15 = smov %s1065_s7  ;;  %19 = sbr.rel (!%p17_p9) target bundleno = 6 (0x6), region = 92 }
 0x1eb   :  { %602 = vsyncpa [#allocation3], 1 }
 0x1ec   :  { %604 = vsyncpa [#allocation3 + $0x1], 1 }
 0x1ed   :  { %605 = vsyncpa [#allocation6], 1 }
 0x1ee   :  { %606 = vsyncpa [#allocation4], 1 }
 0x1ef   :  { %608 = vsyncpa [#allocation4 + $0x1], 1 }

</bundles_post_ra>
